<compile_context>
chip_gen: v5e
topology: v5e:2x2
jax: 0.10.0
libtpu: 0.0.40
codegen_flags: <defaults>
</compile_context>

<pallas_src>
import functools

import jax
import jax.numpy as jnp
import numpy as np
from jax.experimental import pallas as pl
from jax.experimental.pallas import tpu as pltpu


def _round_up(x: int, m: int) -> int:
    return ((x + m - 1) // m) * m


def _linear_kernel(x_ref, w_ref, b_ref, o_ref):
    """One grid step = one batch tile.

    x_ref : (TB, D)    unpadded input rows
    w_ref : (D, OUT)   resident transposed weight
    b_ref : (1, OUT)   bias row
    o_ref : (TB, OUT)  output logits
    """
    acc = jnp.dot(x_ref[...], w_ref[...], preferred_element_type=jnp.float32)
    o_ref[...] = (acc + b_ref[...]).astype(o_ref.dtype)


@functools.partial(jax.jit, static_argnames=("tb",))
def logistic_regression_forward(x, w, b, *, tb=1024):
    """Pallas forward for nn.Linear(input_dim, 2).

    x : (B, D) f32      w : (2, D) f32 (PyTorch layout)      b : (2,) f32
    returns (B, 2) f32
    """
    B, D = x.shape
    out_features = w.shape[0]

    # --- batch-tile sizing -------------------------------------------------
    TB = min(_round_up(B, 8), _round_up(tb, 8))

    # VMEM-aware clamp: keep the double-buffered x tile under ~32 MiB so the
    # working set fits every generation (v7x has only 64 MiB physical VMEM).
    d_lanes = _round_up(D, 128)
    x_tile_budget = 32 * 1024 * 1024
    tb_max = max(8, (x_tile_budget // (2 * d_lanes * 4)) // 8 * 8)
    TB = min(TB, tb_max)

    # Give v7x megacore >= 2 grid steps when the batch is big enough that
    # halving the tile does not drop below the ~512-row roofline knee.
    if B >= 1024 and pl.cdiv(B, TB) < 2:
        TB = _round_up(pl.cdiv(B, 2), 8)

    grid = (pl.cdiv(B, TB),)

    # --- operands: no padding, no extra HBM passes --------------------------
    x = x.astype(jnp.float32)
    wt = w.astype(jnp.float32).T            # (D, OUT): tiny transpose
    br = b.astype(jnp.float32)[None, :]     # (1, OUT)

    # Scoped-VMEM estimate (lane/sublane padded, double-buffered) + headroom.
    # Raising the limit matters mainly on v5e (16 MiB default scoped VMEM).
    n_lanes = _round_up(out_features, 128)
    est = (2 * TB * d_lanes * 4                    # x tiles (in)
           + 2 * _round_up(D, 8) * n_lanes * 4     # weight
           + 2 * 8 * n_lanes * 4                   # bias
           + 2 * TB * n_lanes * 4)                 # out tiles
    vmem_limit = int(min(max(est + (4 << 20), 16 << 20), 64 << 20))

    return pl.pallas_call(
        _linear_kernel,
        out_shape=jax.ShapeDtypeStruct((B, out_features), jnp.float32),
        grid=grid,
        in_specs=[
            pl.BlockSpec((TB, D), lambda i: (i, 0)),            # x tile
            pl.BlockSpec((D, out_features), lambda i: (0, 0)),  # weight (resident)
            pl.BlockSpec((1, out_features), lambda i: (0, 0)),  # bias (resident)
        ],
        out_specs=pl.BlockSpec((TB, out_features), lambda i: (i, 0)),
        compiler_params=pltpu.CompilerParams(
            dimension_semantics=("parallel",),
            vmem_limit_bytes=vmem_limit),
    )(x, wt, br)


def ref_forward(x, w, b):
    """Pure-JAX reference reproducing the PyTorch forward."""
    return x @ w.T + b[None, :]


if __name__ == "__main__":
    # Small shapes consistent with the module: batch=8, input_dim=32, 2 logits.
    B, D, OUT = 8, 32, 2
    key = jax.random.PRNGKey(0)
    kx, kw, kb = jax.random.split(key, 3)

    x = jax.random.normal(kx, (B, D), dtype=jnp.float32)

    # Deterministic PyTorch-style Linear init: U(-1/sqrt(D), 1/sqrt(D)).
    bound = 1.0 / np.sqrt(D)
    w = jax.random.uniform(kw, (OUT, D), minval=-bound, maxval=bound,
                           dtype=jnp.float32)
    b = jax.random.uniform(kb, (OUT,), minval=-bound, maxval=bound,
                           dtype=jnp.float32)

    out = jax.block_until_ready(logistic_regression_forward(x, w, b))
    ref = jax.block_until_ready(ref_forward(x, w, b))

    ok = out.shape == (B, OUT)
    ok &= bool(np.allclose(np.asarray(out), np.asarray(ref),
                           rtol=1e-5, atol=1e-5))

    if ok:
        print("KERNEL_OK")
    else:
        print("MISMATCH")
</pallas_src>

<mosaic_0001>
module attributes {stable_mosaic.version = 11 : i64} {
  func.func @_linear_kernel(%arg0: i32, %arg1: memref<8x32xf32, #tpu.memory_space<vmem>>, %arg2: memref<32x2xf32, #tpu.memory_space<vmem>>, %arg3: memref<1x2xf32, #tpu.memory_space<vmem>>, %arg4: memref<8x2xf32, #tpu.memory_space<vmem>>) attributes {dimension_semantics = [#tpu.dimension_semantics<parallel>], iteration_bounds = array<i64: 1>, scalar_prefetch = 0 : i64, scratch_operands = 0 : i64, tpu.core_type = #tpu.core_type<tc>, window_params = [{transform_indices = @transform_0, window_bounds = array<i64: 8, 32>}, {pipeline_mode = #tpu.pipeline_mode<synchronous>, transform_indices = @transform_1, window_bounds = array<i64: 32, 2>}, {pipeline_mode = #tpu.pipeline_mode<synchronous>, transform_indices = @transform_2, window_bounds = array<i64: 1, 2>}, {transform_indices = @transform_3, window_bounds = array<i64: 8, 2>}]} {
    %c0 = arith.constant 0 : index
    %c0_0 = arith.constant 0 : index
    %0 = vector.load %arg1[%c0, %c0_0] : memref<8x32xf32, #tpu.memory_space<vmem>>, vector<8x32xf32>
    %c0_1 = arith.constant 0 : index
    %c0_2 = arith.constant 0 : index
    %1 = vector.load %arg2[%c0_1, %c0_2] : memref<32x2xf32, #tpu.memory_space<vmem>>, vector<32x2xf32>
    %cst = arith.constant dense<0.000000e+00> : vector<8x2xf32>
    %2 = tpu.matmul %0, %1, %cst {dimension_numbers = #tpu.dot_dimension_numbers<[1], [0], [0], [1], [0, 0, 1, 1], [], []>} : vector<8x32xf32>, vector<32x2xf32>, vector<8x2xf32> -> vector<8x2xf32>
    %c0_3 = arith.constant 0 : index
    %c0_4 = arith.constant 0 : index
    %3 = vector.load %arg3[%c0_3, %c0_4] : memref<1x2xf32, #tpu.memory_space<vmem>>, vector<1x2xf32>
    %4 = vector.broadcast %3 : vector<1x2xf32> to vector<8x2xf32>
    %5 = arith.addf %2, %4 : vector<8x2xf32>
    %c0_5 = arith.constant 0 : index
    %c0_6 = arith.constant 0 : index
    %6 = vector.load %arg4[%c0_5, %c0_6] : memref<8x2xf32, #tpu.memory_space<vmem>>, vector<8x2xf32>
    tpu.vector_store %arg4[%c0_5, %c0_6], %5 {strides = array<i32>} : memref<8x2xf32, #tpu.memory_space<vmem>>, vector<8x2xf32>,
    return
  }
  func.func @transform_0(%arg0: i32) -> (i32, i32) {
    %c0_i32 = arith.constant 0 : i32
    %c0_i32_0 = arith.constant 0 : i32
    return %arg0, %c0_i32 : i32, i32
  }
  func.func @transform_1(%arg0: i32) -> (i32, i32) {
    %c0_i32 = arith.constant 0 : i32
    %c0_i32_0 = arith.constant 0 : i32
    %c0_i32_1 = arith.constant 0 : i32
    return %c0_i32, %c0_i32_0 : i32, i32
  }
  func.func @transform_2(%arg0: i32) -> (i32, i32) {
    %c0_i32 = arith.constant 0 : i32
    %c0_i32_0 = arith.constant 0 : i32
    %c0_i32_1 = arith.constant 0 : i32
    return %c0_i32, %c0_i32_0 : i32, i32
  }
  func.func @transform_3(%arg0: i32) -> (i32, i32) {
    %c0_i32 = arith.constant 0 : i32
    %c0_i32_0 = arith.constant 0 : i32
    return %arg0, %c0_i32 : i32, i32
  }
}

</mosaic_0001>

<bundles_post_ra>
// kernel: logistic_regression_forward.1
= control target key start
LH: loop header
LB: loop body
LE: loop exit
PB: predicated region body
PF: predicated region fallthrough
CT: control target
= control target key end

     0   :  { %vm23_vm0 = vcmask 261120   ;;  %vm47_vm1 = vcmask 15360   ;;  %s96_s1 = inlined_call_operand.vmem [shape: f32[32,2], index: 1, kind: input, shape index: {}]   ;;  %s97_s2 = inlined_call_operand.vmem [shape: f32[1,2], index: 2, kind: input, shape index: {}]   ;;  %s98_s0 = inlined_call_operand.vmem [shape: f32[8,32], index: 0, kind: input, shape index: {}]   ;;  %s99_s3 = inlined_call_operand.vmem [shape: f32[8,2], index: 3, kind: output, shape index: {}]  }
   0x1   :  { %v18_v0 = vld [vmem:[%s96_s1 + $0x18] sm:$0xff]  ;;  %v17_v1 = vld [vmem:[%s96_s1 + $0x10] sm:$0xff]  ;;  %v16_v2 = vld [vmem:[%s96_s1 + $0x8] sm:$0xff] }
   0x2   :  { %39 = vmatpush.msra.mxu0 %v18_v0  ;;  %v15_v3 = vld [vmem:[%s96_s1] sm:$0xff] }
   0x3   :  { %v14_v4 = vld [vmem:[%s98_s0] sm:$0xff] }
   0x4   :  { %40 = vmatpush.msra.mxu0 %v17_v1  ;;  %v54_v5 = vld [vmem:[%s97_s2] ss:$0 sm:$0xff] }
   0x6   :  { %41 = vmatpush.msra.mxu0 %v16_v2 }
   0x8   :  { %42 = vmatpush.msra.mxu0 %v15_v3 }
   0x9   :  { %53 = vmatmul.msk.f32.vlgmr.msra.gmra.mxu0 %vm23_vm0, %v14_v4 }
  0x86   :  { %v44_v6 = vpop.f32.mrf.mxu0 }
  0x87   :  { %v45_v7 = vadd.f32 %v54_v5, %v44_v6 }
  0x89   :  { %48 = vst.msk [vmem:[%s99_s3] sm:$0xff] %vm47_vm1, %v45_v7 }

</bundles_post_ra>
